<compile_context>
chip_gen: v7x
topology: tpu7x:2x2x1
jax: 0.10.0
libtpu: 0.0.40
codegen_flags: <defaults>
</compile_context>

<pallas_src>
import functools

import jax
import jax.numpy as jnp
from jax.experimental import pallas as pl
from jax.experimental.pallas import tpu as pltpu


_VMEM_LIMIT = 32 * 1024 * 1024  # explicit scoped-VMEM budget (safe on v5e/v6e/v7x)


def _pick_tile(dim, target):
    """Largest tile <= target that divides `dim` and is a multiple of 8 (else dim)."""
    if dim <= target:
        return dim
    t = (target // 8) * 8
    while t >= 8:
        if dim % t == 0:
            return t
        t -= 8
    return dim


# ----------------------------- Pallas kernels ------------------------------

def _linear_kernel(x_ref, w_ref, b_ref, o_ref, *, mxu_dtype):
    # x: (TM, K), w: (K, N), b: (1, N) -> o: (TM, N); f32 MXU accumulation.
    acc = jnp.dot(
        x_ref[...].astype(mxu_dtype),
        w_ref[...].astype(mxu_dtype),
        preferred_element_type=jnp.float32,
    )
    o_ref[...] = (acc + b_ref[...].astype(jnp.float32)).astype(o_ref.dtype)


def _linear_layernorm_kernel(x_ref, w_ref, b_ref, g_ref, beta_ref, o_ref, *,
                             eps, mxu_dtype):
    # Matmul + bias with LayerNorm-over-N fused as an epilogue on the output tile.
    acc = jnp.dot(
        x_ref[...].astype(mxu_dtype),
        w_ref[...].astype(mxu_dtype),
        preferred_element_type=jnp.float32,
    )
    y = acc + b_ref[...].astype(jnp.float32)
    mean = jnp.mean(y, axis=-1, keepdims=True)
    var = jnp.mean((y - mean) ** 2, axis=-1, keepdims=True)
    yn = (y - mean) * jax.lax.rsqrt(var + eps)
    o_ref[...] = (
        yn * g_ref[...].astype(jnp.float32) + beta_ref[...].astype(jnp.float32)
    ).astype(o_ref.dtype)


def _attention_kernel(q_ref, kv_ref, ctx_ref, attn_ref, *,
                      scale, num_heads, head_dim, mxu_dtype):
    # q: (TQ, C) token layout, kv: (Nk, 2C) packed [K | V] token layout.
    # ctx: (TQ, C) lane-dense token-layout output, attn: (num_heads, TQ, Nk).
    C = num_heads * head_dim
    q = q_ref[...].astype(jnp.float32)
    kv = kv_ref[...]
    ctx_parts = []
    for h in range(num_heads):  # static unroll; num_heads is small
        lo = h * head_dim
        qh = (q[:, lo:lo + head_dim] * scale).astype(mxu_dtype)
        kh = kv[:, lo:lo + head_dim].astype(mxu_dtype)
        vh = kv[:, C + lo:C + lo + head_dim].astype(mxu_dtype)
        # Scores: contract head dims of q and k directly (no k.T relayout).
        s = jax.lax.dot_general(
            qh, kh, (((1,), (1,)), ((), ())), preferred_element_type=jnp.float32
        )
        m = jnp.max(s, axis=-1, keepdims=True)
        p = jnp.exp(s - m)
        p = p * pl.reciprocal(jnp.sum(p, axis=-1, keepdims=True), approx=True)
        attn_ref[h] = p.astype(attn_ref.dtype)
        o = jax.lax.dot_general(
            p.astype(mxu_dtype), vh, (((1,), (0,)), ((), ())),
            preferred_element_type=jnp.float32,
        )
        ctx_parts.append(o)
    # Single lane-dense (TQ, C) store -> no ctx transpose needed before proj.
    ctx_ref[...] = jnp.concatenate(ctx_parts, axis=-1).astype(ctx_ref.dtype)


# ----------------------------- Pallas wrappers ------------------------------

def pallas_linear(x2d, w, b, *, ln_params=None, eps=1e-5, mxu_dtype=None,
                  row_tile=512):
    """(M, K) @ (K, N) + b, row-tiled over M; optional fused LayerNorm over N.

    # TODO(synk): also tile N for very large N (> ~2048) with a second grid axis.
    """
    M, K = x2d.shape
    N = w.shape[1]
    mxu_dtype = x2d.dtype if mxu_dtype is None else mxu_dtype
    TM = _pick_tile(M, row_tile)
    grid = (M // TM,)
    itemsize = x2d.dtype.itemsize
    cost = pl.CostEstimate(
        flops=2 * M * K * N,
        transcendentals=0,
        bytes_accessed=(M * K + K * N + N + M * N) * itemsize,
    )
    x_spec = pl.BlockSpec((TM, K), lambda i: (i, 0))
    w_spec = pl.BlockSpec((K, N), lambda i: (0, 0))
    v_spec = pl.BlockSpec((1, N), lambda i: (0, 0))  # bias / gamma / beta rows
    o_spec = pl.BlockSpec((TM, N), lambda i: (i, 0))
    if ln_params is None:
        kernel = functools.partial(_linear_kernel, mxu_dtype=mxu_dtype)
        in_specs = [x_spec, w_spec, v_spec]
        args = (x2d, w, b.reshape(1, N))
    else:
        gamma, beta = ln_params
        kernel = functools.partial(_linear_layernorm_kernel, eps=eps,
                                   mxu_dtype=mxu_dtype)
        in_specs = [x_spec, w_spec, v_spec, v_spec, v_spec]
        args = (x2d, w, b.reshape(1, N), gamma.reshape(1, N), beta.reshape(1, N))
    return pl.pallas_call(
        kernel,
        out_shape=jax.ShapeDtypeStruct((M, N), x2d.dtype),
        grid=grid,
        in_specs=in_specs,
        out_specs=o_spec,
        compiler_params=pltpu.CompilerParams(
            dimension_semantics=("parallel",),
            vmem_limit_bytes=_VMEM_LIMIT,
        ),
        cost_estimate=cost,
    )(*args)


def pallas_attention(q_tokens, kv_tokens, *, num_heads, scale, mxu_dtype=None,
                     q_tile=256):
    """q_tokens: (B, Nq, C), kv_tokens: (B, Nk, 2C) packed [K | V].

    Returns ctx (B, Nq, C) in token layout and attn (B, num_heads, Nq, Nk).
    """
    B, Nq, C = q_tokens.shape
    Nk = kv_tokens.shape[1]
    d = C // num_heads
    mxu_dtype = q_tokens.dtype if mxu_dtype is None else mxu_dtype
    # 256-row q tile keeps the (TQ, Nk) score tiles within v7x's smaller VMEM.
    TQ = _pick_tile(Nq, q_tile)
    grid = (B, Nq // TQ)
    sq = pl.Squeezed()
    in_specs = [
        pl.BlockSpec((sq, TQ, C), lambda b, qi: (b, qi, 0)),
        # Same block index for every q-tile of a batch -> K/V resident in VMEM.
        pl.BlockSpec((sq, Nk, 2 * C), lambda b, qi: (b, 0, 0)),
    ]
    out_specs = [
        pl.BlockSpec((sq, TQ, C), lambda b, qi: (b, qi, 0)),
        pl.BlockSpec((sq, num_heads, TQ, Nk), lambda b, qi: (b, 0, qi, 0)),
    ]
    itemsize = q_tokens.dtype.itemsize
    cost = pl.CostEstimate(
        flops=4 * B * Nq * Nk * C,
        transcendentals=B * num_heads * Nq * Nk,
        bytes_accessed=(B * Nq * C + B * Nk * 2 * C + B * Nq * C
                        + B * num_heads * Nq * Nk) * itemsize,
    )
    ctx, attn = pl.pallas_call(
        functools.partial(_attention_kernel, scale=scale, num_heads=num_heads,
                          head_dim=d, mxu_dtype=mxu_dtype),
        out_shape=(
            jax.ShapeDtypeStruct((B, Nq, C), q_tokens.dtype),
            jax.ShapeDtypeStruct((B, num_heads, Nq, Nk), q_tokens.dtype),
        ),
        grid=grid,
        in_specs=in_specs,
        out_specs=out_specs,
        compiler_params=pltpu.CompilerParams(
            dimension_semantics=("parallel", "parallel"),
            vmem_limit_bytes=_VMEM_LIMIT,
        ),
        cost_estimate=cost,
    )(q_tokens, kv_tokens)
    return ctx, attn


# --------------------------- Module forward pass ----------------------------

def efficient_self_attention(x, H, W, params, *, num_heads, sr_ratio,
                             mxu_dtype=None):
    """x: (B, H*W, C) channels-last tokens. Returns (out, attn_output dict)."""
    B, HW, C = x.shape
    assert HW == H * W
    d = C // num_heads
    scale = d ** (-0.5)

    # Q projection, kept in token layout (B, HW, C) — no per-head transpose.
    q_tokens = pallas_linear(
        x.reshape(B * HW, C), params["q_w"], params["q_b"], mxu_dtype=mxu_dtype
    ).reshape(B, HW, C)

    # Spatial reduction: conv(k=R, s=R) as non-overlapping patch extraction +
    # matmul, with LayerNorm fused into the matmul epilogue (one HBM pass).
    if sr_ratio > 1:
        R = sr_ratio
        Ho, Wo = H // R, W // R
        patches = (
            x.reshape(B, Ho, R, Wo, R, C)
            .transpose(0, 1, 3, 2, 4, 5)            # (B, Ho, Wo, kh, kw, cin)
            .reshape(B * Ho * Wo, R * R * C)
        )
        x_kv = pallas_linear(
            patches, params["sr_w_mat"], params["sr_b"],
            ln_params=(params["ln_g"], params["ln_b"]), eps=1e-5,
            mxu_dtype=mxu_dtype,
        ).reshape(B, Ho * Wo, C)
    else:
        x_kv = x
    Nk = x_kv.shape[1]

    # KV projection, kept packed as (B, Nk, 2C); head / K-vs-V slabs are
    # selected inside the attention kernel (no chunk split / transpose).
    kv_tokens = pallas_linear(
        x_kv.reshape(B * Nk, C), params["kv_w"], params["kv_b"],
        mxu_dtype=mxu_dtype,
    ).reshape(B, Nk, 2 * C)

    # Attention: scores, softmax, weighted sum. Dropout = identity (eval).
    ctx, attn = pallas_attention(q_tokens, kv_tokens, num_heads=num_heads,
                                 scale=scale, mxu_dtype=mxu_dtype)

    # Output projection (ctx already in token layout). Dropout = identity (eval).
    out = pallas_linear(
        ctx.reshape(B * HW, C), params["proj_w"], params["proj_b"],
        mxu_dtype=mxu_dtype,
    ).reshape(B, HW, C)

    # Per-head Q/K/V views only for the returned dict (not on the compute path).
    Q = q_tokens.reshape(B, HW, num_heads, d).transpose(0, 2, 1, 3)
    K = kv_tokens[..., :C].reshape(B, Nk, num_heads, d).transpose(0, 2, 1, 3)
    V = kv_tokens[..., C:].reshape(B, Nk, num_heads, d).transpose(0, 2, 1, 3)
    attn_output = {"attn": attn, "query": Q, "key": K, "value": V}
    return out, attn_output


# ------------------------------- Reference ----------------------------------

def reference(x, H, W, params, *, num_heads, sr_ratio):
    B, HW, C = x.shape
    d = C // num_heads
    scale = d ** (-0.5)
    Q = (x @ params["q_w"] + params["q_b"]).reshape(B, HW, num_heads, d).transpose(0, 2, 1, 3)
    if sr_ratio > 1:
        R = sr_ratio
        Ho, Wo = H // R, W // R
        patches = (
            x.reshape(B, Ho, R, Wo, R, C)
            .transpose(0, 1, 3, 2, 4, 5)
            .reshape(B, Ho * Wo, R * R * C)
        )
        xk = patches @ params["sr_w_mat"] + params["sr_b"]
        mean = jnp.mean(xk, axis=-1, keepdims=True)
        var = jnp.mean((xk - mean) ** 2, axis=-1, keepdims=True)
        xk = (xk - mean) / jnp.sqrt(var + 1e-5) * params["ln_g"] + params["ln_b"]
    else:
        xk = x
    Nk = xk.shape[1]
    kv = xk @ params["kv_w"] + params["kv_b"]
    K = kv[..., :C].reshape(B, Nk, num_heads, d).transpose(0, 2, 1, 3)
    V = kv[..., C:].reshape(B, Nk, num_heads, d).transpose(0, 2, 1, 3)
    s = jnp.einsum("bnid,bnjd->bnij", Q, K) * scale
    attn = jax.nn.softmax(s, axis=-1)
    ctx = jnp.einsum("bnij,bnjd->bnid", attn, V)
    ctx = ctx.transpose(0, 2, 1, 3).reshape(B, HW, C)
    out = ctx @ params["proj_w"] + params["proj_b"]
    return out, attn


# --------------------------------- Main --------------------------------------

if __name__ == "__main__":
    # Small deterministic configuration.
    B = 2
    C = 32          # attn_dim
    num_heads = 2
    H = W = 8
    sr_ratio = 2
    HW = H * W
    dtype = jnp.float32

    key = jax.random.PRNGKey(0)
    keys = jax.random.split(key, 10)

    def init(k, shape, s=0.05):
        return (jax.random.normal(k, shape, dtype=dtype) * s).astype(dtype)

    R = sr_ratio
    # Conv2d weight in PyTorch layout (C_out, C_in, R, R); reshape to matmul
    # form with input-patch order (kh, kw, cin).
    sr_w = init(keys[0], (C, C, R, R))
    sr_w_mat = jnp.transpose(sr_w, (2, 3, 1, 0)).reshape(R * R * C, C)

    params = {
        "sr_w_mat": sr_w_mat,
        "sr_b": init(keys[1], (C,)),
        "ln_g": jnp.ones((C,), dtype),
        "ln_b": jnp.zeros((C,), dtype),
        "q_w": init(keys[2], (C, C)),
        "q_b": init(keys[3], (C,)),
        "kv_w": init(keys[4], (C, 2 * C)),
        "kv_b": init(keys[5], (2 * C,)),
        "proj_w": init(keys[6], (C, C)),
        "proj_b": init(keys[7], (C,)),
    }

    x = jax.random.normal(keys[8], (B, HW, C), dtype=dtype)

    out, attn_output = efficient_self_attention(
        x, H, W, params, num_heads=num_heads, sr_ratio=sr_ratio
    )
    out = jax.block_until_ready(out)
    attn = jax.block_until_ready(attn_output["attn"])

    # Sanity check against a plain-JAX reference (tolerances account for the
    # EUP approximate-reciprocal softmax normalization).
    ref_out, ref_attn = reference(x, H, W, params, num_heads=num_heads, sr_ratio=sr_ratio)
    assert out.shape == (B, HW, C)
    assert attn.shape == (B, num_heads, HW, (H // R) * (W // R))
    assert jnp.allclose(out, ref_out, atol=2e-3, rtol=2e-3), "output mismatch"
    assert jnp.allclose(attn, ref_attn, atol=2e-3, rtol=2e-3), "attn mismatch"

    print("KERNEL_OK")
</pallas_src>

<mosaic_0001>
module attributes {stable_mosaic.version = 11 : i64} {
  func.func @_linear_kernel(%arg0: i32, %arg1: memref<128x32xf32, #tpu.memory_space<vmem>>, %arg2: memref<32x32xf32, #tpu.memory_space<vmem>>, %arg3: memref<1x32xf32, #tpu.memory_space<vmem>>, %arg4: memref<128x32xf32, #tpu.memory_space<vmem>>) attributes {dimension_semantics = [#tpu.dimension_semantics<parallel>], iteration_bounds = array<i64: 1>, scalar_prefetch = 0 : i64, scratch_operands = 0 : i64, tpu.core_type = #tpu.core_type<tc>, window_params = [{transform_indices = @transform_0, window_bounds = array<i64: 128, 32>}, {pipeline_mode = #tpu.pipeline_mode<synchronous>, transform_indices = @transform_1, window_bounds = array<i64: 32, 32>}, {pipeline_mode = #tpu.pipeline_mode<synchronous>, transform_indices = @transform_2, window_bounds = array<i64: 1, 32>}, {transform_indices = @transform_3, window_bounds = array<i64: 128, 32>}]} {
    %c0 = arith.constant 0 : index
    %c0_0 = arith.constant 0 : index
    %0 = vector.load %arg1[%c0, %c0_0] : memref<128x32xf32, #tpu.memory_space<vmem>>, vector<128x32xf32>
    %c0_1 = arith.constant 0 : index
    %c0_2 = arith.constant 0 : index
    %1 = vector.load %arg2[%c0_1, %c0_2] : memref<32x32xf32, #tpu.memory_space<vmem>>, vector<32x32xf32>
    %cst = arith.constant dense<0.000000e+00> : vector<128x32xf32>
    %2 = tpu.matmul %0, %1, %cst {dimension_numbers = #tpu.dot_dimension_numbers<[1], [0], [0], [1], [0, 0, 1, 1], [], []>} : vector<128x32xf32>, vector<32x32xf32>, vector<128x32xf32> -> vector<128x32xf32>
    %c0_3 = arith.constant 0 : index
    %c0_4 = arith.constant 0 : index
    %3 = vector.load %arg3[%c0_3, %c0_4] : memref<1x32xf32, #tpu.memory_space<vmem>>, vector<1x32xf32>
    %4 = vector.broadcast %3 : vector<1x32xf32> to vector<128x32xf32>
    %5 = arith.addf %2, %4 : vector<128x32xf32>
    %c0_5 = arith.constant 0 : index
    %c0_6 = arith.constant 0 : index
    %6 = vector.load %arg4[%c0_5, %c0_6] : memref<128x32xf32, #tpu.memory_space<vmem>>, vector<128x32xf32>
    tpu.vector_store %arg4[%c0_5, %c0_6], %5 {strides = array<i32>} : memref<128x32xf32, #tpu.memory_space<vmem>>, vector<128x32xf32>,
    return
  }
  func.func @transform_0(%arg0: i32) -> (i32, i32) {
    %c0_i32 = arith.constant 0 : i32
    %c0_i32_0 = arith.constant 0 : i32
    return %arg0, %c0_i32 : i32, i32
  }
  func.func @transform_1(%arg0: i32) -> (i32, i32) {
    %c0_i32 = arith.constant 0 : i32
    %c0_i32_0 = arith.constant 0 : i32
    %c0_i32_1 = arith.constant 0 : i32
    return %c0_i32, %c0_i32_0 : i32, i32
  }
  func.func @transform_2(%arg0: i32) -> (i32, i32) {
    %c0_i32 = arith.constant 0 : i32
    %c0_i32_0 = arith.constant 0 : i32
    %c0_i32_1 = arith.constant 0 : i32
    return %c0_i32, %c0_i32_0 : i32, i32
  }
  func.func @transform_3(%arg0: i32) -> (i32, i32) {
    %c0_i32 = arith.constant 0 : i32
    %c0_i32_0 = arith.constant 0 : i32
    return %arg0, %c0_i32 : i32, i32
  }
}

</mosaic_0001>

<bundles_post_ra>
// kernel: tpu_custom_call.1
= control target key start
LH: loop header
LB: loop body
LE: loop exit
PB: predicated region body
PF: predicated region fallthrough
CT: control target
= control target key end

     0   :  { %vm41_vm0 = vcmask 261120   ;;  %s499_s1 = inlined_call_operand.vmem [shape: f32[32,32], index: 1, kind: input, shape index: {}]   ;;  %s500_s0 = inlined_call_operand.vmem [shape: f32[128,32], index: 0, kind: input, shape index: {}]   ;;  %s501_s2 = inlined_call_operand.vmem [shape: f32[1,32], index: 2, kind: input, shape index: {}]   ;;  %s502_s3 = inlined_call_operand.vmem [shape: f32[128,32], index: 3, kind: output, shape index: {}]  }
   0x1   :  { %v30_v0 = vld [vmem:[%s499_s1] sm:$0xff]  ;;  %v31_v1 = vld [vmem:[%s499_s1 + $0x8] sm:$0xff]  ;;  %v32_v2 = vld [vmem:[%s499_s1 + $0x10] sm:$0xff] }
   0x2   :  { %v324_v3 = vpack.c.bf16 %v31_v1, %v30_v0  ;;  %v33_v4 = vld [vmem:[%s499_s1 + $0x18] sm:$0xff]  ;;  %v14_v5 = vld [vmem:[%s500_s0] sm:$0xff]  ;;  %v15_v8 = vld [vmem:[%s500_s0 + $0x8] sm:$0xff] }
   0x3   :  { %v22_v6 = vld [vmem:[%s500_s0 + $0x40] sm:$0xff]  ;;  %v328_v7 = vpack.c.bf16 %v33_v4, %v32_v2  ;;  %300 = vmatprep.mubr.msk.f32.mxu0 %vm41_vm0, %v14_v5  ;;  %v23_v9 = vld [vmem:[%s500_s0 + $0x48] sm:$0xff]  ;;  %v16_v10 = vld [vmem:[%s500_s0 + $0x10] sm:$0xff] }
   0x4   :  { %312 = vmatprep.mubr.msk.f32.mxu1 %vm41_vm0, %v22_v6  ;;  %325 = vmatprep.subr.bf16.mxu0 %v324_v3  ;;  %v24_v11 = vld [vmem:[%s500_s0 + $0x50] sm:$0xff]  ;;  %v17_v12 = vld [vmem:[%s500_s0 + $0x18] sm:$0xff]  ;;  %v18_v14 = vld [vmem:[%s500_s0 + $0x20] sm:$0xff] }
   0x5   :  { %332 = vmatprep.subr.bf16.mxu1 %v324_v3  ;;  %327 = vmatpush3.bf16.msra.mxu0 %v324_v3  ;;  %v25_v13 = vld [vmem:[%s500_s0 + $0x58] sm:$0xff]  ;;  %v26_v15 = vld [vmem:[%s500_s0 + $0x60] sm:$0xff]  ;;  %v19_v16 = vld [vmem:[%s500_s0 + $0x28] sm:$0xff] }
   0x6   :  { %334 = vmatpush3.bf16.msra.mxu1 %v324_v3  ;;  %329 = vmatprep.subr.bf16.mxu0 %v328_v7  ;;  %v27_v17 = vld [vmem:[%s500_s0 + $0x68] sm:$0xff]  ;;  %v20_v18 = vld [vmem:[%s500_s0 + $0x30] sm:$0xff]  ;;  %v21_v20 = vld [vmem:[%s500_s0 + $0x38] sm:$0xff] }
   0x7   :  { %333 = vmatprep.subr.bf16.mxu1 %v328_v7  ;;  %v28_v19 = vld [vmem:[%s500_s0 + $0x70] sm:$0xff]  ;;  %v29_v21 = vld [vmem:[%s500_s0 + $0x78] sm:$0xff]  ;;  %v255_v22 = vld [vmem:[%s501_s2] ss:$0 sm:$0xff] }
   0x9   :  { %331 = vmatpush3.bf16.msra.mxu0 %v328_v7 }
   0xa   :  { %335 = vmatpush3.bf16.msra.mxu1 %v328_v7 }
   0xc   :  { %301 = vmatmul.mubr.msk.f32.vlgmr.msra.gmra.mrb[0].mxu0 %vm41_vm0, %v15_v8 }
   0xd   :  { %313 = vmatmul.mubr.msk.f32.vlgmr.msra.gmra.mrb[0].mxu1 %vm41_vm0, %v23_v9  ;;  %303 = vmatprep.mubr.msk.f32.mxu0 %vm41_vm0, %v16_v10 }
   0xe   :  { %315 = vmatprep.mubr.msk.f32.mxu1 %vm41_vm0, %v24_v11 }
  0x10   :  { %304 = vmatmul.mubr.msk.f32.gmra.mrb[2].mxu0 %vm41_vm0, %v17_v12 }
  0x11   :  { %316 = vmatmul.mubr.msk.f32.gmra.mrb[2].mxu1 %vm41_vm0, %v25_v13  ;;  %306 = vmatprep.mubr.msk.f32.mxu0 %vm41_vm0, %v18_v14 }
  0x12   :  { %318 = vmatprep.mubr.msk.f32.mxu1 %vm41_vm0, %v26_v15 }
  0x14   :  { %307 = vmatmul.mubr.msk.f32.gmra.mrb[4].mxu0 %vm41_vm0, %v19_v16 }
  0x15   :  { %319 = vmatmul.mubr.msk.f32.gmra.mrb[4].mxu1 %vm41_vm0, %v27_v17  ;;  %309 = vmatprep.mubr.msk.f32.mxu0 %vm41_vm0, %v20_v18 }
  0x16   :  { %321 = vmatprep.mubr.msk.f32.mxu1 %vm41_vm0, %v28_v19 }
  0x18   :  { %310 = vmatmul.mubr.msk.f32.gmra.mrb[6].mxu0 %vm41_vm0, %v21_v20 }
  0x19   :  { %322 = vmatmul.mubr.msk.f32.gmra.mrb[6].mxu1 %vm41_vm0, %v29_v21 }
  0xdf   :  { %v302_v23 = vpop.f32.mrb[0].mxu0 }
  0xe0   :  { %v314_v24 = vpop.f32.mrb[0].mxu1  ;;  %v162_v25 = vadd.f32 %v302_v23, %v255_v22  ;;  %v156_v27 = vpop.f32.mrb[1].mxu0 }
  0xe1   :  { %v202_v26 = vadd.f32 %v314_v24, %v255_v22  ;;  %v196_v28 = vpop.f32.mrb[1].mxu1  ;;  %v157_v29 = vadd.f32 %v255_v22, %v156_v27 }
  0xe2   :  { %v197_v30 = vadd.f32 %v255_v22, %v196_v28  ;;  %236 = vst.msk [vmem:[%s502_s3 + $0x8] sm:$0xff] %vm41_vm0, %v162_v25 }
  0xe3   :  { %244 = vst.msk [vmem:[%s502_s3 + $0x48] sm:$0xff] %vm41_vm0, %v202_v26  ;;  %235 = vst.msk [vmem:[%s502_s3] sm:$0xff] %vm41_vm0, %v157_v29  ;;  %v305_v31 = vpop.f32.mrb[2].mxu0 }
  0xe4   :  { %243 = vst.msk [vmem:[%s502_s3 + $0x40] sm:$0xff] %vm41_vm0, %v197_v30  ;;  %v317_v32 = vpop.f32.mrb[2].mxu1  ;;  %v172_v33 = vadd.f32 %v305_v31, %v255_v22  ;;  %v166_v35 = vpop.f32.mrb[3].mxu0 }
  0xe5   :  { %v212_v34 = vadd.f32 %v317_v32, %v255_v22  ;;  %v206_v36 = vpop.f32.mrb[3].mxu1  ;;  %v167_v37 = vadd.f32 %v255_v22, %v166_v35 }
  0xe6   :  { %v207_v38 = vadd.f32 %v255_v22, %v206_v36  ;;  %238 = vst.msk [vmem:[%s502_s3 + $0x18] sm:$0xff] %vm41_vm0, %v172_v33 }
  0xe7   :  { %246 = vst.msk [vmem:[%s502_s3 + $0x58] sm:$0xff] %vm41_vm0, %v212_v34  ;;  %237 = vst.msk [vmem:[%s502_s3 + $0x10] sm:$0xff] %vm41_vm0, %v167_v37  ;;  %v308_v39 = vpop.f32.mrb[4].mxu0 }
  0xe8   :  { %245 = vst.msk [vmem:[%s502_s3 + $0x50] sm:$0xff] %vm41_vm0, %v207_v38  ;;  %v320_v40 = vpop.f32.mrb[4].mxu1  ;;  %v182_v41 = vadd.f32 %v308_v39, %v255_v22  ;;  %v176_v43 = vpop.f32.mrb[5].mxu0 }
  0xe9   :  { %v222_v42 = vadd.f32 %v320_v40, %v255_v22  ;;  %v216_v44 = vpop.f32.mrb[5].mxu1  ;;  %v177_v45 = vadd.f32 %v255_v22, %v176_v43 }
  0xea   :  { %v217_v46 = vadd.f32 %v255_v22, %v216_v44  ;;  %240 = vst.msk [vmem:[%s502_s3 + $0x28] sm:$0xff] %vm41_vm0, %v182_v41 }
  0xeb   :  { %248 = vst.msk [vmem:[%s502_s3 + $0x68] sm:$0xff] %vm41_vm0, %v222_v42  ;;  %239 = vst.msk [vmem:[%s502_s3 + $0x20] sm:$0xff] %vm41_vm0, %v177_v45  ;;  %v311_v47 = vpop.f32.mrb[6].mxu0 }
  0xec   :  { %247 = vst.msk [vmem:[%s502_s3 + $0x60] sm:$0xff] %vm41_vm0, %v217_v46  ;;  %v323_v48 = vpop.f32.mrb[6].mxu1  ;;  %v192_v49 = vadd.f32 %v311_v47, %v255_v22  ;;  %v186_v51 = vpop.f32.mrb[7].mxu0 }
  0xed   :  { %v232_v50 = vadd.f32 %v323_v48, %v255_v22  ;;  %v226_v52 = vpop.f32.mrb[7].mxu1  ;;  %v187_v53 = vadd.f32 %v255_v22, %v186_v51 }
  0xee   :  { %v227_v54 = vadd.f32 %v255_v22, %v226_v52  ;;  %242 = vst.msk [vmem:[%s502_s3 + $0x38] sm:$0xff] %vm41_vm0, %v192_v49 }
  0xef   :  { %250 = vst.msk [vmem:[%s502_s3 + $0x78] sm:$0xff] %vm41_vm0, %v232_v50  ;;  %241 = vst.msk [vmem:[%s502_s3 + $0x30] sm:$0xff] %vm41_vm0, %v187_v53 }
  0xf0   :  { %249 = vst.msk [vmem:[%s502_s3 + $0x70] sm:$0xff] %vm41_vm0, %v227_v54 }

</bundles_post_ra>
